<compile_context>
chip_gen: v6e
topology: v6e:2x2x1
jax: 0.10.0
libtpu: 0.0.40
codegen_flags: <defaults>
</compile_context>

<pallas_src>
import jax
import jax.numpy as jnp
from jax.experimental import pallas as pl
from jax.experimental.pallas import tpu as pltpu


def _round_up(x: int, m: int) -> int:
    return ((x + m - 1) // m) * m


def _linear_kernel(x_ref, w_ref, b_ref, o_ref):
    # x_ref: (tile_b, H)  w_ref: (H, tile_n)  b_ref: (1, tile_n)  o_ref: (tile_b, tile_n)
    acc = jnp.dot(x_ref[...], w_ref[...], preferred_element_type=jnp.float32)
    o_ref[...] = (acc + b_ref[...]).astype(o_ref.dtype)


def prepare_finetune_head_params(weight, bias, param_dtype=None):
    """One-time parameter prep (NOT in the per-step hot path).

    weight: (O, H) in PyTorch nn.Linear convention
    bias:   (O,)
    param_dtype: optionally cast the prepared weight/bias (e.g. jnp.bfloat16) to halve
                 resident VMEM / HBM traffic; default keeps the original dtype so the
                 forward matches nn.Linear fp32 numerics exactly.
    Returns (w_t_padded (H, O_pad), bias_padded (1, O_pad), O) with O_pad a multiple of 128
    and the padded columns zero-initialized (lane-dense output stores, padding sliced off).
    """
    O, H = weight.shape
    dtype = weight.dtype if param_dtype is None else param_dtype
    O_pad = _round_up(O, 128)
    w_t = jnp.zeros((H, O_pad), dtype).at[:, :O].set(weight.T.astype(dtype))
    b_p = jnp.zeros((1, O_pad), dtype).at[0, :O].set(bias.astype(dtype))
    return w_t, b_p, O


def _vmem_budget_bytes() -> int:
    """~75% of physical VMEM: ~96 MiB on v5e/v6e (128 MiB), ~48 MiB on v7x (64 MiB/core)."""
    try:
        cap = int(pltpu.get_tpu_info().vmem_capacity_bytes)
    except Exception:  # query unavailable (e.g. interpret mode) -> conservative default
        cap = 64 * 1024 * 1024
    return (cap * 3) // 4


def _choose_tiles(B: int, H: int, O_pad: int, x_item: int, w_item: int, budget: int):
    """Pick (tile_b, tile_n) honoring the per-generation VMEM budget.

    The BlockSpec pipeline allocates 2 buffers per operand even for grid-invariant
    index_maps, so weight/bias residency is counted at 2x.
    """
    B8 = _round_up(B, 8)

    # --- tile_n: keep the full (H, O_pad) weight VMEM-resident when it fits; otherwise
    #     stream 128-column panels (double-buffered) across an extra grid axis. ---
    w_col_bytes = 2 * (H + 1) * w_item            # 2 buffers x (weight column + bias elem)
    if O_pad * w_col_bytes <= budget // 2:
        tile_n = O_pad
    else:
        tile_n = max((((budget // 2) // w_col_bytes) // 128) * 128, 128)
        # TODO(synk): add K-tiling (grid over H with an f32 VMEM accumulator + pl.when
        # init/finalize) for hidden sizes too large for a single (H, tile_n) panel.

    # --- tile_b: largest fixed-menu entry that fits the remaining VMEM and still leaves
    #     >=~4 batch grid steps (pipeline overlap; both v7x TensorCores busy). ---
    resident = tile_n * w_col_bytes
    row_bytes = 2 * (H + tile_n) * x_item          # double-buffered x + out tiles, per row
    overlap_cap = max(_round_up(pl.cdiv(B, 4), 8), 8)
    tile_b = 8
    for cand in (512, 256, 128, 64, 32, 16, 8):
        if cand > B8 or cand > overlap_cap:
            continue
        if resident + cand * row_bytes <= budget:
            tile_b = cand
            break
    return tile_b, tile_n


def finetune_head_forward(pooled_output, w_t_padded, bias_padded, output_size):
    """FinetuneHead.forward: pooled_output @ weight.T + bias.

    pooled_output: (B, H)
    w_t_padded:    (H, O_pad)  from prepare_finetune_head_params
    bias_padded:   (1, O_pad)
    """
    B, H = pooled_output.shape
    H_w, O_pad = w_t_padded.shape
    assert H_w == H, "hidden_size mismatch between activations and weight"

    budget = _vmem_budget_bytes()
    x_item = pooled_output.dtype.itemsize
    w_item = w_t_padded.dtype.itemsize
    tile_b, tile_n = _choose_tiles(B, H, O_pad, x_item, w_item, budget)

    grid = (pl.cdiv(B, tile_b), pl.cdiv(O_pad, tile_n))

    out_padded = pl.pallas_call(
        _linear_kernel,
        out_shape=jax.ShapeDtypeStruct((B, O_pad), pooled_output.dtype),
        grid=grid,
        in_specs=[
            pl.BlockSpec((tile_b, H), lambda i, j: (i, 0)),   # streamed activation tiles
            pl.BlockSpec((H, tile_n), lambda i, j: (0, j)),   # weight panel (resident if nj==1)
            pl.BlockSpec((1, tile_n), lambda i, j: (0, j)),   # bias panel
        ],
        out_specs=pl.BlockSpec((tile_b, tile_n), lambda i, j: (i, j)),
        compiler_params=pltpu.CompilerParams(
            dimension_semantics=("parallel", "parallel"),
            vmem_limit_bytes=int(budget),
        ),
        cost_estimate=pl.CostEstimate(
            flops=2 * B * H * O_pad,
            bytes_accessed=(B * H + H * O_pad + O_pad + B * O_pad) * x_item,
            transcendentals=0,
        ),
    )(pooled_output, w_t_padded, bias_padded)

    # Slice off only the zero-padded output columns (batch was never padded).
    return out_padded[:, :output_size]


if __name__ == "__main__":
    # Synthetic config: hidden_size=32, output_size=16, batch=8
    batch, hidden_size, output_size = 8, 32, 16

    key = jax.random.PRNGKey(0)
    kx, kw, kb = jax.random.split(key, 3)

    pooled_output = jax.random.normal(kx, (batch, hidden_size), dtype=jnp.float32)

    # Deterministic parameter init (mimics nn.Linear uniform(-1/sqrt(H), 1/sqrt(H)))
    bound = 1.0 / jnp.sqrt(jnp.float32(hidden_size))
    weight = jax.random.uniform(kw, (output_size, hidden_size),
                                minval=-bound, maxval=bound, dtype=jnp.float32)
    bias = jax.random.uniform(kb, (output_size,),
                              minval=-bound, maxval=bound, dtype=jnp.float32)

    # One-time parameter prep (constant params -> done outside the forward path).
    w_t_padded, bias_padded, out_size = prepare_finetune_head_params(weight, bias)

    out = finetune_head_forward(pooled_output, w_t_padded, bias_padded, out_size)
    jax.block_until_ready(out)

    # Reference check against plain JAX
    ref = pooled_output @ weight.T + bias
    assert out.shape == (batch, output_size)
    assert jnp.allclose(out, ref, atol=1e-5, rtol=1e-5)

    print("KERNEL_OK")
</pallas_src>

<mosaic_0001>
module attributes {stable_mosaic.version = 11 : i64} {
  func.func @_linear_kernel(%arg0: i32, %arg1: i32, %arg2: memref<8x32xf32, #tpu.memory_space<vmem>>, %arg3: memref<32x128xf32, #tpu.memory_space<vmem>>, %arg4: memref<1x128xf32, #tpu.memory_space<vmem>>, %arg5: memref<8x128xf32, #tpu.memory_space<vmem>>) attributes {dimension_semantics = [#tpu.dimension_semantics<parallel>, #tpu.dimension_semantics<parallel>], iteration_bounds = array<i64: 1, 1>, scalar_prefetch = 0 : i64, scratch_operands = 0 : i64, tpu.core_type = #tpu.core_type<tc>, window_params = [{transform_indices = @transform_0, window_bounds = array<i64: 8, 32>}, {transform_indices = @transform_1, window_bounds = array<i64: 32, 128>}, {transform_indices = @transform_2, window_bounds = array<i64: 1, 128>}, {transform_indices = @transform_3, window_bounds = array<i64: 8, 128>}]} {
    %c0 = arith.constant 0 : index
    %c0_0 = arith.constant 0 : index
    %0 = vector.load %arg2[%c0, %c0_0] : memref<8x32xf32, #tpu.memory_space<vmem>>, vector<8x32xf32>
    %c0_1 = arith.constant 0 : index
    %c0_2 = arith.constant 0 : index
    %1 = vector.load %arg3[%c0_1, %c0_2] : memref<32x128xf32, #tpu.memory_space<vmem>>, vector<32x128xf32>
    %cst = arith.constant dense<0.000000e+00> : vector<8x128xf32>
    %2 = tpu.matmul %0, %1, %cst {dimension_numbers = #tpu.dot_dimension_numbers<[1], [0], [0], [1], [0, 0, 1, 1], [], []>} : vector<8x32xf32>, vector<32x128xf32>, vector<8x128xf32> -> vector<8x128xf32>
    %c0_3 = arith.constant 0 : index
    %c0_4 = arith.constant 0 : index
    %3 = vector.load %arg4[%c0_3, %c0_4] : memref<1x128xf32, #tpu.memory_space<vmem>>, vector<1x128xf32>
    %4 = vector.broadcast %3 : vector<1x128xf32> to vector<8x128xf32>
    %5 = arith.addf %2, %4 : vector<8x128xf32>
    %c0_5 = arith.constant 0 : index
    %c0_6 = arith.constant 0 : index
    %6 = vector.load %arg5[%c0_5, %c0_6] : memref<8x128xf32, #tpu.memory_space<vmem>>, vector<8x128xf32>
    tpu.vector_store %arg5[%c0_5, %c0_6], %5 {strides = array<i32>} : memref<8x128xf32, #tpu.memory_space<vmem>>, vector<8x128xf32>,
    return
  }
  func.func @transform_0(%arg0: i32, %arg1: i32) -> (i32, i32) {
    %c0_i32 = arith.constant 0 : i32
    %c0_i32_0 = arith.constant 0 : i32
    return %arg0, %c0_i32 : i32, i32
  }
  func.func @transform_1(%arg0: i32, %arg1: i32) -> (i32, i32) {
    %c0_i32 = arith.constant 0 : i32
    %c0_i32_0 = arith.constant 0 : i32
    return %c0_i32, %arg1 : i32, i32
  }
  func.func @transform_2(%arg0: i32, %arg1: i32) -> (i32, i32) {
    %c0_i32 = arith.constant 0 : i32
    %c0_i32_0 = arith.constant 0 : i32
    return %c0_i32, %arg1 : i32, i32
  }
  func.func @transform_3(%arg0: i32, %arg1: i32) -> (i32, i32) {
    %c0_i32 = arith.constant 0 : i32
    return %arg0, %arg1 : i32, i32
  }
}

</mosaic_0001>

<bundles_post_ra>
// kernel: tpu_custom_call.1
= control target key start
LH: loop header
LB: loop body
LE: loop exit
PB: predicated region body
PF: predicated region fallthrough
CT: control target
= control target key end

     0   :  { %8 = vsyncpa [#allocation3], 0  ;;  %s274_s0 = inlined_call_operand.hbm [shape: f32[8,32], index: 0, kind: input, shape index: {}]   ;;  %s275_s1 = inlined_call_operand.hbm [shape: f32[32,128], index: 1, kind: input, shape index: {}]   ;;  %s276_s2 = inlined_call_operand.vmem [shape: f32[1,128], index: 2, kind: input, shape index: {}]   ;;  %s277_s3 = inlined_call_operand.hbm [shape: f32[8,128], index: 3, kind: output, shape index: {}]  }
   0x1   :  { %9 = vsyncpa [#allocation6], 0 }
   0x2   :  { %10 = vsyncpa [#allocation4], 0  ;;  %s235_s12 = smov [#allocation2]   ;;  %s236_s14 = smov [#allocation5]  }
   0x3   :  { %s17_s13 = sshll.u32 %s235_s12, 4  ;;  %s26_s15 = sshll.u32 %s236_s14, 4  ;;  %s18_s13 = int_to_ptr.vmem [resolvable:$true] %s17_s13  ;;  %s27_s15 = int_to_ptr.vmem [resolvable:$true] %s26_s15 }
   0x4   :  { %s177_s16 = scalar_lea.vmem %s18_s13, 128  ;;  %p182_p1 = scmp.lt.s32.totalorder %s18_s13, %s18_s13 }
   0x5   :  { %p178_p0 = scmp.ne.s32.totalorder %s18_s13, %s177_s16  ;;  %p183_p2 = scmp.lt.s32.totalorder %s177_s16, %s177_s16 }
   0x7   :  { %p184_p3 = por %p183_p2, %p182_p1 }
   0x9   :  { %p185_p4 = pnand %p184_p3, %p178_p0 }
   0xb   :  { %188 = shalt.err (!%p185_p4)
}
   0xc   :  { %20 = dma.hbm_to_vmem [thread:$0]  %s274_s0, 128, %s18_s13, [#allocation3]  }
   0xd   :  { %s197_s19 = scalar_lea.vmem %s27_s15, 512  ;;  %p202_p6 = scmp.lt.s32.totalorder %s27_s15, %s27_s15 }
   0xe   :  { %p198_p5 = scmp.ne.s32.totalorder %s27_s15, %s197_s19  ;;  %p203_p7 = scmp.lt.s32.totalorder %s197_s19, %s197_s19 }
  0x10   :  { %p204_p8 = por %p203_p7, %p202_p6 }
  0x12   :  { %p205_p9 = pnand %p204_p8, %p198_p5 }
  0x14   :  { %208 = shalt.err (!%p205_p9)
}
  0x15   :  { %s237_s20 = smov 128   ;;  %s238_s21 = smov 8  }
  0x16   :  { %32 = dma.hbm_to_vmem [thread:$0]  %s275_s1, 512, %s27_s15, [#allocation6], %s237_s20, %s237_s20, %s238_s21  }
  0x17   :  { %229 = dma.done.wait [#allocation3], 128  }
  0x18   :  { %230 = vsyncadd [#allocation3], 4294967168 }
  0x19   :  { %231 = dma.done.wait [#allocation6], 512  }
  0x1a   :  { %232 = vsyncadd [#allocation6], 4294966784  ;;  %v239_v0 = vmov 0.0   ;;  %vm240_vm0 = vmmov 0   ;;  %v45_v1 = vld [vmem:[#allocation5 + $0x18] sm:$0xff]  ;;  %v44_v2 = vld [vmem:[#allocation5 + $0x10] sm:$0xff] }
  0x1b   :  { %151 = vmatprep.subr.mxu0 %v239_v0  ;;  %159 = vmatprep.mubr.msk.f32.mxu0 %vm240_vm0, %v239_v0  ;;  %v43_v3 = vld [vmem:[#allocation5 + $0x8] sm:$0xff]  ;;  %v42_v4 = vld [vmem:[#allocation5] sm:$0xff]  ;;  %v41_v5 = vld [vmem:[#allocation2] sm:$0xff]  ;;  %vm53_vm1 = vcmask 261120   ;;  %s241_s24 = smov [#allocation7]  }
  0x1c   :  { %152 = vmatpush3.msra.mxu0 %v45_v1  ;;  %v144_v6 = vld [vmem:[%s276_s2] ss:$0 sm:$0xff]  ;;  %s134_s25 = sshll.u32 %s241_s24, 4  ;;  %s135_s25 = int_to_ptr.vmem [resolvable:$true] %s134_s25 }
  0x1d   :  { %153 = vmatprep.subr.mxu0 %v239_v0  ;;  %s209_s26 = scalar_lea.vmem %s135_s25, 128  ;;  %p214_p11 = scmp.lt.s32.totalorder %s135_s25, %s135_s25 }
  0x1e   :  { %154 = vmatpush3.msra.mxu0 %v44_v2  ;;  %p210_p10 = scmp.ne.s32.totalorder %s135_s25, %s209_s26  ;;  %p215_p12 = scmp.lt.s32.totalorder %s209_s26, %s209_s26 }
  0x1f   :  { %155 = vmatprep.subr.mxu0 %v239_v0 }
  0x20   :  { %156 = vmatpush3.msra.mxu0 %v43_v3  ;;  %p216_p13 = por %p215_p12, %p214_p11 }
  0x21   :  { %157 = vmatprep.subr.mxu0 %v239_v0 }
  0x22   :  { %158 = vmatpush3.msra.mxu0 %v42_v4  ;;  %p217_p0 = pnand %p216_p13, %p210_p10 }
  0x23   :  { %160 = vmatmul.mubr.msk.f32.vlgmr.msra.gmra.mxu0 %vm53_vm1, %v41_v5 }
  0xe3   :  { %v123_v7 = vpop.f32.mrf.mxu0 }
  0xe4   :  { %v124_v8 = vadd.f32 %v144_v6, %v123_v7 }
  0xe5   :  { %v161_v9 = vpop.f32.mrf.mxu0 }
  0xe6   :  { %127 = vst [vmem:[#allocation7] sm:$0xff] %v124_v8 }
  0xe7   :  { %220 = shalt.err (!%p217_p0)
}
  0xe8   :  { %137 = dma.vmem_to_hbm [thread:$0]  %s135_s25, 128, %s277_s3, [#allocation4]  }
  0xe9   :  { %233 = dma.done.wait [#allocation4], 128  }
  0xea   :  { %234 = vsyncadd [#allocation4], 4294967168 }
  0xeb   :  { %141 = vsyncpa [#allocation3], 1 }
  0xec   :  { %142 = vsyncpa [#allocation6], 1 }
  0xed   :  { %143 = vsyncpa [#allocation4], 1 }

</bundles_post_ra>
